<compile_context>
chip_gen: v5e
topology: v5e:2x2
jax: 0.10.0
libtpu: 0.0.40
codegen_flags: <defaults>
</compile_context>

<pallas_src>
import math
import functools

import jax
import jax.numpy as jnp
from jax.experimental import pallas as pl
from jax.experimental.pallas import tpu as pltpu


def _round_up(x, m):
    return ((x + m - 1) // m) * m


# ----------------------------------------------------------------------------
# Fused FFN kernel.  Grid = (m_blocks, h_blocks); hidden axis is the reduction.
# ----------------------------------------------------------------------------
def _ffn_kernel(x_ref, w1_ref, b1_ref, w2_ref, b2_ref, o_ref, acc_ref, *,
                apply_dropout, dropout_rate, seed):
    h_idx = pl.program_id(1)

    @pl.when(h_idx == 0)
    def _init():
        acc_ref[...] = jnp.zeros_like(acc_ref)

    x = x_ref[...]
    if x.dtype != jnp.bfloat16:
        x = x.astype(jnp.bfloat16)

    # dense1 chunk: [tm, d_in] @ [d_in, th] -> f32 on the MXU
    h = jnp.dot(x, w1_ref[...], preferred_element_type=jnp.float32)
    h = jnp.maximum(h + b1_ref[...], 0.0)                       # bias + ReLU

    if apply_dropout:
        # Training-mode inverted dropout via the on-chip PRNG.
        # TODO(synk): stream differs from torch's nn.Dropout RNG.
        pltpu.prng_seed(seed + pl.program_id(0) * pl.num_programs(1) + h_idx)
        bits = pltpu.bitcast(pltpu.prng_random_bits(h.shape), jnp.uint32)
        threshold = jnp.uint32(min(int(dropout_rate * (2 ** 32)), 2 ** 32 - 1))
        keep = bits >= threshold                                # P(keep) = 1-p
        h = jnp.where(keep, h * (1.0 / (1.0 - dropout_rate)), 0.0)

    # dense2 chunk: accumulate [tm, th] @ [th, d_out] into the resident f32 acc.
    acc_ref[...] += jnp.dot(h.astype(jnp.bfloat16), w2_ref[...],
                            preferred_element_type=jnp.float32)

    @pl.when(h_idx == pl.num_programs(1) - 1)
    def _finalize():
        o_ref[...] = (acc_ref[...] + b2_ref[...]).astype(o_ref.dtype)


# ----------------------------------------------------------------------------
# Tiling heuristics.
# ----------------------------------------------------------------------------
def _choose_tm(m, block_m):
    """Row-block: >=2 blocks when possible (v7x megacore), 128-aligned when M
    is large, and preferring an exact divisor of M to avoid padding x."""
    if m >= 256:
        tm = min(block_m, _round_up((m + 1) // 2, 128))
    else:
        tm = 8 if m <= 8 else min(block_m, _round_up((m + 1) // 2, 8))
    if m % tm != 0:
        step = 128 if tm % 128 == 0 else 8
        for cand in range(tm, step - 1, -step):
            if m % cand == 0:
                return cand
    return tm


def _choose_th(h_pad, tm, d_in, d_out_pad, x_bytes, dropout,
               budget=40 * 1024 * 1024):
    """Hidden-chunk width: largest 128-multiple divisor of h_pad whose
    resident footprint fits a conservative VMEM budget (v7x-safe)."""
    per_col = (2 * (d_in + d_out_pad) * 2      # W1 col + W2 row (bf16, <=2 bufs)
               + 2 * 4                         # b1 (f32, <=2 bufs)
               + tm * (4 + 2)                  # f32 hidden + bf16 copy
               + (tm * 4 if dropout else 0))   # random bits
    fixed = (2 * tm * d_in * x_bytes           # x double buffer
             + 2 * tm * d_out_pad * x_bytes    # out double buffer
             + tm * d_out_pad * 4              # f32 accumulator scratch
             + 2 * d_out_pad * 4)              # b2
    avail = max(budget - fixed, 128 * per_col)
    cap = max(128, (avail // per_col) // 128 * 128)

    q = h_pad // 128
    best = 1
    for d in range(1, q + 1):                  # pick largest divisor within cap
        if q % d == 0 and 128 * d <= cap:
            best = d
    return 128 * best


# ----------------------------------------------------------------------------
# Wrapper.
# ----------------------------------------------------------------------------
def ffn_forward(x, params, *, dropout_rate=0.1, training=False, seed=0,
                block_m=512):
    orig_lead = x.shape[:-1]
    d_in = x.shape[-1]
    hdim = params["w1"].shape[1]
    d_out = params["w2"].shape[1]
    m = int(math.prod(orig_lead)) if orig_lead else 1

    # torch semantics for p >= 1 in training: every hidden unit dropped.
    if training and float(dropout_rate) >= 1.0:
        return jnp.broadcast_to(params["b2"].astype(x.dtype),
                                (*orig_lead, d_out))

    apply_dropout = bool(training) and 0.0 < float(dropout_rate) < 1.0
    x2 = x.reshape(m, d_in)
    x_bytes = jnp.dtype(x.dtype).itemsize

    # Pad feature dims to 128 multiples by padding the (cheap, one-time)
    # weights only.  Zero hidden columns stay exactly 0 through ReLU/dropout
    # and the zero W2 rows contribute nothing; padded output columns = 0 bias,
    # sliced off below.  x is never padded on its feature dim.
    h_pad = _round_up(hdim, 128)
    d_out_pad = _round_up(d_out, 128)

    w1 = params["w1"].astype(jnp.bfloat16)                       # [d_in, H]
    w2 = params["w2"].astype(jnp.bfloat16)                       # [H, d_out]
    b1 = params["b1"].astype(jnp.float32).reshape(1, -1)         # [1, H]
    b2 = params["b2"].astype(jnp.float32).reshape(1, -1)         # [1, d_out]
    if h_pad != hdim:
        w1 = jnp.pad(w1, ((0, 0), (0, h_pad - hdim)))
        b1 = jnp.pad(b1, ((0, 0), (0, h_pad - hdim)))
        w2 = jnp.pad(w2, ((0, h_pad - hdim), (0, 0)))
    if d_out_pad != d_out:
        w2 = jnp.pad(w2, ((0, 0), (0, d_out_pad - d_out)))
        b2 = jnp.pad(b2, ((0, 0), (0, d_out_pad - d_out)))

    # Row-block choice; jnp.pad on x is only a fallback when no divisor exists.
    tm = _choose_tm(m, block_m)
    m_pad = _round_up(m, tm)
    if m_pad != m:
        x2 = jnp.pad(x2, ((0, m_pad - m), (0, 0)))
    m_blocks = m_pad // tm

    # Hidden-chunk choice (1 chunk unless weights/hidden exceed the budget).
    th = _choose_th(h_pad, tm, d_in, d_out_pad, x_bytes, apply_dropout)
    h_blocks = h_pad // th
    w_bufs = 1 if h_blocks == 1 else 2
    # Constant-index blocks gain nothing from double buffering.
    w_mode = pl.Buffered(1) if h_blocks == 1 else None

    def _spec(shape, index_map, mode=None):
        if mode is None:
            return pl.BlockSpec(shape, index_map)
        return pl.BlockSpec(shape, index_map, pipeline_mode=mode)

    # Explicit VMEM budget (defaults: 16 MiB v5e / 32 MiB v6e,v7x).
    footprint = (
        2 * tm * d_in * x_bytes                       # x double buffer
        + 2 * tm * d_out_pad * x_bytes                # out double buffer
        + w_bufs * (d_in * th + th * d_out_pad) * 2   # bf16 weight tiles
        + w_bufs * th * 4 + d_out_pad * 4             # biases
        + tm * th * (4 + 2)                           # f32 hidden + bf16 copy
        + tm * d_out_pad * 4                          # accumulator scratch
        + (tm * th * 4 if apply_dropout else 0)       # random bits
    )
    vmem_limit = int(min(max(int(footprint * 1.3), 8 * 1024 * 1024),
                         64 * 1024 * 1024))

    cost = pl.CostEstimate(
        flops=2 * m_pad * (d_in * h_pad + h_pad * d_out_pad),
        transcendentals=0,
        bytes_accessed=(m_pad * d_in * x_bytes + m_pad * d_out_pad * x_bytes
                        + (d_in * h_pad + h_pad * d_out_pad) * 2
                        + (h_pad + d_out_pad) * 4),
    )

    kernel = functools.partial(
        _ffn_kernel,
        apply_dropout=apply_dropout,
        dropout_rate=float(dropout_rate),
        seed=int(seed),
    )

    out = pl.pallas_call(
        kernel,
        out_shape=jax.ShapeDtypeStruct((m_pad, d_out_pad), x.dtype),
        grid=(m_blocks, h_blocks),
        in_specs=[
            _spec((tm, d_in), lambda i, h: (i, 0)),                    # x rows
            _spec((d_in, th), lambda i, h: (0, h), w_mode),            # W1
            _spec((1, th), lambda i, h: (0, h), w_mode),               # b1
            _spec((th, d_out_pad), lambda i, h: (h, 0), w_mode),       # W2
            _spec((1, d_out_pad), lambda i, h: (0, 0), pl.Buffered(1)),  # b2
        ],
        out_specs=pl.BlockSpec((tm, d_out_pad), lambda i, h: (i, 0)),
        scratch_shapes=[pltpu.VMEM((tm, d_out_pad), jnp.float32)],
        compiler_params=pltpu.CompilerParams(
            dimension_semantics=("parallel", "arbitrary"),
            vmem_limit_bytes=vmem_limit),
        cost_estimate=cost,
    )(x2, w1, b1, w2, b2)

    out = out[:m, :d_out]
    return out.reshape(*orig_lead, d_out)


# ----------------------------------------------------------------------------
# Deterministic parameter init (nn.Linear layout as y = x @ W + b).
# ----------------------------------------------------------------------------
def init_params(key, ffn_num, ffn_num_hiddens, ffn_out):
    k1, k2, k3, k4 = jax.random.split(key, 4)
    return {
        "w1": 0.02 * jax.random.normal(k1, (ffn_num, ffn_num_hiddens), jnp.float32),
        "b1": 0.02 * jax.random.normal(k2, (ffn_num_hiddens,), jnp.float32),
        "w2": 0.02 * jax.random.normal(k3, (ffn_num_hiddens, ffn_out), jnp.float32),
        "b2": 0.02 * jax.random.normal(k4, (ffn_out,), jnp.float32),
    }


def _ffn_reference(x, params):
    """Pure-JAX f32 reference (eval mode: dropout is identity)."""
    h = jnp.maximum(x @ params["w1"] + params["b1"], 0.0)
    return h @ params["w2"] + params["b2"]


if __name__ == "__main__":
    # X = [batch, seq, ffn_num]
    B, L = 2, 8
    FFN_NUM, FFN_HID, FFN_OUT = 32, 64, 32

    root = jax.random.PRNGKey(0)
    kx, kp = jax.random.split(root)
    x = jax.random.normal(kx, (B, L, FFN_NUM), jnp.float32)
    params = init_params(kp, FFN_NUM, FFN_HID, FFN_OUT)

    # Eval-mode forward (dropout identity), matching model.eval() in torch.
    out = ffn_forward(x, params, dropout_rate=0.1, training=False)
    out = jax.block_until_ready(out)

    assert out.shape == (B, L, FFN_OUT)
    ref = _ffn_reference(x, params)
    assert jnp.allclose(out, ref, atol=2e-2, rtol=2e-2), (
        "Pallas FFN output deviates from f32 reference beyond bf16 tolerance")

    print("KERNEL_OK")
</pallas_src>

<mosaic_0001>
module attributes {stable_mosaic.version = 11 : i64} {
  func.func @_ffn_kernel(%arg0: i32, %arg1: i32, %arg2: memref<8x32xf32, #tpu.memory_space<vmem>>, %arg3: memref<32x128xbf16, #tpu.memory_space<vmem>>, %arg4: memref<1x128xf32, #tpu.memory_space<vmem>>, %arg5: memref<128x128xbf16, #tpu.memory_space<vmem>>, %arg6: memref<1x128xf32, #tpu.memory_space<vmem>>, %arg7: memref<8x128xf32, #tpu.memory_space<vmem>>, %arg8: memref<8x128xf32, #tpu.memory_space<vmem>>) attributes {dimension_semantics = [#tpu.dimension_semantics<parallel>, #tpu.dimension_semantics<arbitrary>], iteration_bounds = array<i64: 2, 1>, scalar_prefetch = 0 : i64, scratch_operands = 1 : i64, tpu.core_type = #tpu.core_type<tc>, window_params = [{transform_indices = @transform_0, window_bounds = array<i64: 8, 32>}, {pipeline_mode = #tpu.pipeline_mode<synchronous>, transform_indices = @transform_1, window_bounds = array<i64: 32, 128>}, {pipeline_mode = #tpu.pipeline_mode<synchronous>, transform_indices = @transform_2, window_bounds = array<i64: 1, 128>}, {pipeline_mode = #tpu.pipeline_mode<synchronous>, transform_indices = @transform_3, window_bounds = array<i64: 128, 128>}, {pipeline_mode = #tpu.pipeline_mode<synchronous>, transform_indices = @transform_4, window_bounds = array<i64: 1, 128>}, {transform_indices = @transform_5, window_bounds = array<i64: 8, 128>}]} {
    %c0_i32 = arith.constant 0 : i32
    %0 = arith.cmpi eq, %arg1, %c0_i32 : i32
    %1 = arith.extui %0 : i1 to i32
    %c0_i32_0 = arith.constant 0 : i32
    %2 = arith.cmpi ne, %1, %c0_i32_0 : i32
    scf.if %2 {
      %cst_16 = arith.constant 0.000000e+00 : f32
      %21 = vector.broadcast %cst_16 : f32 to vector<8x128xf32>
      %c0_17 = arith.constant 0 : index
      %c0_18 = arith.constant 0 : index
      %22 = vector.load %arg8[%c0_17, %c0_18] : memref<8x128xf32, #tpu.memory_space<vmem>>, vector<8x128xf32>
      tpu.vector_store %arg8[%c0_17, %c0_18], %21 {strides = array<i32>} : memref<8x128xf32, #tpu.memory_space<vmem>>, vector<8x128xf32>,
    } else {
    }
    %c0 = arith.constant 0 : index
    %c0_1 = arith.constant 0 : index
    %3 = vector.load %arg2[%c0, %c0_1] : memref<8x32xf32, #tpu.memory_space<vmem>>, vector<8x32xf32>
    %4 = arith.truncf %3 : vector<8x32xf32> to vector<8x32xbf16>
    %c0_2 = arith.constant 0 : index
    %c0_3 = arith.constant 0 : index
    %5 = vector.load %arg3[%c0_2, %c0_3] : memref<32x128xbf16, #tpu.memory_space<vmem>>, vector<32x128xbf16>
    %cst = arith.constant dense<0.000000e+00> : vector<8x128xf32>
    %6 = tpu.matmul %4, %5, %cst {dimension_numbers = #tpu.dot_dimension_numbers<[1], [0], [0], [1], [0, 0, 1, 1], [], []>} : vector<8x32xbf16>, vector<32x128xbf16>, vector<8x128xf32> -> vector<8x128xf32>
    %c0_4 = arith.constant 0 : index
    %c0_5 = arith.constant 0 : index
    %7 = vector.load %arg4[%c0_4, %c0_5] : memref<1x128xf32, #tpu.memory_space<vmem>>, vector<1x128xf32>
    %8 = vector.broadcast %7 : vector<1x128xf32> to vector<8x128xf32>
    %9 = arith.addf %6, %8 : vector<8x128xf32>
    %cst_6 = arith.constant 0.000000e+00 : f32
    %10 = vector.broadcast %cst_6 : f32 to vector<8x128xf32>
    %11 = arith.maximumf %9, %10 : vector<8x128xf32>
    %c0_7 = arith.constant 0 : index
    %c0_8 = arith.constant 0 : index
    %12 = vector.load %arg8[%c0_7, %c0_8] : memref<8x128xf32, #tpu.memory_space<vmem>>, vector<8x128xf32>
    %13 = arith.truncf %11 : vector<8x128xf32> to vector<8x128xbf16>
    %c0_9 = arith.constant 0 : index
    %c0_10 = arith.constant 0 : index
    %14 = vector.load %arg5[%c0_9, %c0_10] : memref<128x128xbf16, #tpu.memory_space<vmem>>, vector<128x128xbf16>
    %cst_11 = arith.constant dense<0.000000e+00> : vector<8x128xf32>
    %15 = tpu.matmul %13, %14, %cst_11 {dimension_numbers = #tpu.dot_dimension_numbers<[1], [0], [0], [1], [0, 0, 1, 1], [], []>} : vector<8x128xbf16>, vector<128x128xbf16>, vector<8x128xf32> -> vector<8x128xf32>
    %16 = arith.addf %12, %15 : vector<8x128xf32>
    %c0_12 = arith.constant 0 : index
    %c0_13 = arith.constant 0 : index
    %17 = vector.load %arg8[%c0_12, %c0_13] : memref<8x128xf32, #tpu.memory_space<vmem>>, vector<8x128xf32>
    tpu.vector_store %arg8[%c0_12, %c0_13], %16 {strides = array<i32>} : memref<8x128xf32, #tpu.memory_space<vmem>>, vector<8x128xf32>,
    %c0_i32_14 = arith.constant 0 : i32
    %18 = arith.cmpi eq, %arg1, %c0_i32_14 : i32
    %19 = arith.extui %18 : i1 to i32
    %c0_i32_15 = arith.constant 0 : i32
    %20 = arith.cmpi ne, %19, %c0_i32_15 : i32
    scf.if %20 {
      %c0_16 = arith.constant 0 : index
      %c0_17 = arith.constant 0 : index
      %21 = vector.load %arg8[%c0_16, %c0_17] : memref<8x128xf32, #tpu.memory_space<vmem>>, vector<8x128xf32>
      %c0_18 = arith.constant 0 : index
      %c0_19 = arith.constant 0 : index
      %22 = vector.load %arg6[%c0_18, %c0_19] : memref<1x128xf32, #tpu.memory_space<vmem>>, vector<1x128xf32>
      %23 = vector.broadcast %22 : vector<1x128xf32> to vector<8x128xf32>
      %24 = arith.addf %21, %23 : vector<8x128xf32>
      %c0_20 = arith.constant 0 : index
      %c0_21 = arith.constant 0 : index
      %25 = vector.load %arg7[%c0_20, %c0_21] : memref<8x128xf32, #tpu.memory_space<vmem>>, vector<8x128xf32>
      tpu.vector_store %arg7[%c0_20, %c0_21], %24 {strides = array<i32>} : memref<8x128xf32, #tpu.memory_space<vmem>>, vector<8x128xf32>,
    } else {
    }
    return
  }
  func.func @transform_0(%arg0: i32, %arg1: i32) -> (i32, i32) {
    %c0_i32 = arith.constant 0 : i32
    %c0_i32_0 = arith.constant 0 : i32
    return %arg0, %c0_i32 : i32, i32
  }
  func.func @transform_1(%arg0: i32, %arg1: i32) -> (i32, i32) {
    %c0_i32 = arith.constant 0 : i32
    %c0_i32_0 = arith.constant 0 : i32
    return %c0_i32, %arg1 : i32, i32
  }
  func.func @transform_2(%arg0: i32, %arg1: i32) -> (i32, i32) {
    %c0_i32 = arith.constant 0 : i32
    %c0_i32_0 = arith.constant 0 : i32
    return %c0_i32, %arg1 : i32, i32
  }
  func.func @transform_3(%arg0: i32, %arg1: i32) -> (i32, i32) {
    %c0_i32 = arith.constant 0 : i32
    %c0_i32_0 = arith.constant 0 : i32
    return %arg1, %c0_i32 : i32, i32
  }
  func.func @transform_4(%arg0: i32, %arg1: i32) -> (i32, i32) {
    %c0_i32 = arith.constant 0 : i32
    %c0_i32_0 = arith.constant 0 : i32
    %c0_i32_1 = arith.constant 0 : i32
    return %c0_i32, %c0_i32_0 : i32, i32
  }
  func.func @transform_5(%arg0: i32, %arg1: i32) -> (i32, i32) {
    %c0_i32 = arith.constant 0 : i32
    %c0_i32_0 = arith.constant 0 : i32
    return %arg0, %c0_i32 : i32, i32
  }
}

</mosaic_0001>

<bundles_post_ra>
// kernel: tpu_custom_call.1
= control target key start
LH: loop header
LB: loop body
LE: loop exit
PB: predicated region body
PF: predicated region fallthrough
CT: control target
= control target key end

     0   :  { %10 = vsyncpa [#allocation4], 0  ;;  %s1105_s0 = inlined_call_operand.hbm [shape: f32[16,32], index: 0, kind: input, shape index: {}]   ;;  %s1106_s1 = inlined_call_operand.hbm [shape: bf16[32,128], index: 1, kind: input, shape index: {}]   ;;  %s1107_s2 = inlined_call_operand.vmem [shape: f32[1,128], index: 2, kind: input, shape index: {}]   ;;  %s1108_s3 = inlined_call_operand.hbm [shape: bf16[128,128], index: 3, kind: input, shape index: {}]   ;;  %s1109_s4 = inlined_call_operand.vmem [shape: f32[1,128], index: 4, kind: input, shape index: {}]   ;;  %s1110_s5 = inlined_call_operand.hbm [shape: f32[16,128], index: 5, kind: output, shape index: {}]  }
   0x1   :  { %12 = vsyncpa [#allocation4 + $0x1], 0 }
   0x2   :  { %13 = vsyncpa [#allocation7], 0 }
   0x3   :  { %14 = vsyncpa [#allocation5], 0 }
   0x4   :  { %16 = vsyncpa [#allocation5 + $0x1], 0  ;;  %s951_s18 = smov 0   ;;  %s953_s19 = smov 0  }
   0x5   :  { %s955_s20 = smov 0   ;;  %s957_s21 = smov 0  }
   0x6   :  { %s959_s22 = smov 0   ;;  %s961_s23 = smov 0  }
   0x7 LB: > { %s583_s24 = sadd.s32 4294967295, %s915_s23   ;;  %p585_p0 = scmp.ge.s32.totalorder %s915_s23, 1  ;;  %s915_s23 = sphi %s961_s23, %s22_s23   ;;  %s911_s22 = sphi %s959_s22, %s1120_s22   ;;  %s907_s21 = sphi %s957_s21, %s1119_s21   ;;  %s903_s20 = sphi %s955_s20, %s1118_s20   ;;  %s899_s19 = sphi %s953_s19, %s1117_s19   ;;  %s895_s18 = sphi %s951_s18, %s1116_s18  }
   0x8   : > { %p985_p1 = scmp.eq.s32.totalorder %s583_s24, 0  ;;  %p190_p2 = scmp.lt.s32.totalorder %s915_s23, 3 }
   0x9   : > { %s203_s28 = sshll.u32 %s1106_s1, 4  ;;  %s917_s30 = smov [#allocation6]   ;;  %s204_s28 = int_to_ptr.hbm [resolvable:$true] %s203_s28 }
   0xa   : > { %p993_p3 = pnand %p585_p0, %p190_p2  ;;  %s205_s6 = sshll.u32 %s917_s30, 4  ;;  %s206_s6 = int_to_ptr.vmem [resolvable:$true] %s205_s6 }
   0xb   : > { %p589_p6 = scmp.ge.s32.totalorder %s915_s23, 2  ;;  %s226_s9 = sshll.u32 %s1108_s3, 4  ;;  %s227_s9 = int_to_ptr.hbm [resolvable:$true] %s226_s9 }
   0xc   : > { %p664_p4 = pneg %p993_p3  ;;  %s918_s10 = smov 64  }
   0xd   : > { %s919_s11 = smov 4   ;;  %s920_s12 = smov [#allocation8]  }
   0xe   : > { %p665_p5 = pnand %p664_p4, %p985_p1  ;;  %s228_s13 = sshll.u32 %s920_s12, 4  ;;  %s229_s13 = int_to_ptr.vmem [resolvable:$true] %s228_s13 }
   0xf   : > { %s34_s14 = sadd.s32 1, %s911_s22  ;;  %s584_s15 = sadd.s32 4294967294, %s915_s23  }
  0x10   : > { %667 = dma.hbm_to_vmem [thread:$0]  (!%p665_p5), %s204_s28, 256, %s206_s6, [#allocation7], %s918_s10, %s918_s10, %s919_s11  }
  0x11   : > { %670 = dma.hbm_to_vmem [thread:$0]  (!%p665_p5), %s227_s9, 1024, %s229_s13, [#allocation7], %s918_s10, %s918_s10, %s919_s11  }
  0x12   : > { %p36_p7 = scmp.ge.s32.totalorder %s34_s14, 2  ;;  %s41_s16 = sadd.s32 1, %s903_s20 }
  0x13   : > { %p48_p8 = scmp.ne.s32.totalorder %s903_s20, %s899_s19  ;;  %p49_p9 = scmp.eq.s32.totalorder %s915_s23, 0 }
  0x14   : > { %s1122_s14 = smov (%p36_p7, %s34_s14), 0  ;;  %p54_p10 = scmp.ne.s32.totalorder %s899_s19, %s895_s18 }
  0x15   : > { %s38_s17 = ssub.s32 %s911_s22, %s1122_s14  ;;  %p177_p11 = scmp.eq.s32.totalorder %s583_s24, 1 }
  0x16   : > { %p39_p12 = scmp.eq.s32.totalorder %s38_s17, 0  ;;  %p1021_p13 = por %p985_p1, %p54_p10 }
  0x17   : > { %p1025_p0 = por %p177_p11, %p48_p8  ;;  %p183_p2 = scmp.eq.s32.totalorder %s584_s15, 1 }
  0x18   : > { %s1030_s28 = scalar_select %p39_p12, %s903_s20, %s41_s16  }
  0x19   : > { %p50_p4 = por %p49_p9, %p48_p8  ;;  %p1032_p5 = por %p183_p2, %p54_p10 }
  0x1a   : > { %s245_s6 = sand.u32 1, %s903_s20   ;;  %s591_s24 = sshll.u32 %s911_s22, 3 }
  0x1b   : > { %p681_p7 = scmp.lt.s32.totalorder %s915_s23, 2  ;;  %s590_s7 = sshll.u32 %s245_s6, 3 }
  0x1c   : > { %s253_s10 = scalar_lea.hbm %s1105_s0, %s591_s24  ;;  %s249_s12 = scalar_lea.vmem [#allocation3], %s590_s7 }
  0x1d   : > { %s255_s11 = sshll.u32 %s253_s10, 4  ;;  %s257_s13 = sshll.u32 %s249_s12, 4  ;;  %s256_s11 = int_to_ptr.hbm [resolvable:$true] %s255_s11  ;;  %s258_s13 = int_to_ptr.vmem [resolvable:$true] %s257_s13 }
  0x1e   : > { %p672_p11 = pnand %p681_p7, %p50_p4  ;;  %s246_s15 = scalar_lea.sflag [#allocation4], %s245_s6 }
  0x1f   : > { %266 = sbr.rel (%p993_p3) target bundleno = 313 (0x139), region = 40  ;;  %s1045_s16 = sand.u32 (!%p993_p3), 1, %s899_s19  }
  0x20   : > { %674 = dma.hbm_to_vmem [thread:$0]  (!%p672_p11), %s256_s11, 128, %s258_s13, %s246_s15  }
  0x21   : > { %s593_s17 = sshll.u32 (!%p993_p3), %s1045_s16, 3  ;;  %s269_s24 = scalar_lea.sflag (!%p993_p3), [#allocation4], %s1045_s16 }
  0x22   : > { %s272_s7 = scalar_lea.vmem (!%p993_p3), [#allocation3], %s593_s17 }
  0x24   : > { %882 = dma.done.wait (%p1021_p13), %s269_s24, 128  }
  0x25   : > { %884 = vsyncadd (%p1021_p13), %s269_s24, 4294967168 }
  0x26   : > { %886 = dma.done.wait (%p985_p1), [#allocation7], 1280  }
  0x27   : > { %888 = vsyncadd (%p985_p1), [#allocation7], 4294966016  ;;  %v643_v0 = vld [vmem:[#allocation6 + $0x8] sm:$0xff]  ;;  %v642_v2 = vld [vmem:[#allocation6] sm:$0xff]  ;;  %vm345_vm0 = vcmask 261120   ;;  %s639_s26 = sshll.u32 %s907_s21, 3 }
  0x28   : > { %v651_v1 = vld [vmem:[#allocation8 + $0x38] sm:$0xff]  ;;  %355 = vmatpush.bf16.msra.mxu0 %v643_v0  ;;  %v323_v3 = vld [vmem:[%s272_s7] sm:$0xff]  ;;  %v650_v4 = vld [vmem:[#allocation8 + $0x30] sm:$0xff]  ;;  %s465_s9 = scalar_lea.hbm %s1110_s5, %s639_s26  ;;  %s312_s12 = scalar_lea.vmem [#allocation9], %s593_s17 }
  0x29   : > { %429 = vmatpush.bf16.msra.mxu1 %v651_v1  ;;  %v324_v5 = vpack.c.bf16 %v323_v3, %v323_v3  ;;  %v649_v6 = vld [vmem:[#allocation8 + $0x28] sm:$0xff]  ;;  %v648_v7 = vld [vmem:[#allocation8 + $0x20] sm:$0xff]  ;;  %v647_v8 = vld [vmem:[#allocation8 + $0x18] sm:$0xff]  ;;  %s467_s13 = sshll.u32 %s312_s12, 4  ;;  %s469_s15 = sshll.u32 %s465_s9, 4  ;;  %s468_s13 = int_to_ptr.vmem [resolvable:$true] %s467_s13  ;;  %s470_s15 = int_to_ptr.hbm [resolvable:$true] %s469_s15 }
  0x2a   : > { %v646_v9 = vld [vmem:[#allocation8 + $0x10] sm:$0xff]  ;;  %v645_v10 = vld [vmem:[#allocation8 + $0x8] sm:$0xff]  ;;  %v644_v11 = vld [vmem:[#allocation8] sm:$0xff]  ;;  %s455_s24 = scalar_lea.sflag [#allocation5], %s1045_s16  ;;  %s843_s21 = sshra.s32 %s470_s15, 4  ;;  %s844_s21 = int_to_ptr.hbm [resolvable:$true] %s843_s21 }
  0x2b   : > { %v737_v12 = vld [vmem:[%s1107_s2] ss:$0 sm:$0xff]  ;;  %s845_s7 = scalar_lea.hbm %s844_s21, 8  ;;  %s849_s26 = scalar_lea.hbm %s1110_s5, 16 }
  0x2c   : > { %356 = vmatpush.bf16.msra.mxu0 %v642_v2  ;;  %v738_v18 = vld [vmem:[%s1109_s4] ss:$0 sm:$0xff]  ;;  %p846_p1 = scmp.ne.s32.totalorder %s844_s21, %s845_s7  ;;  %p850_p9 = scmp.lt.s32.totalorder %s844_s21, %s1110_s5 }
  0x2d   : > { %430 = vmatpush.bf16.msra.mxu1 %v650_v4  ;;  %p851_p10 = scmp.lt.s32.totalorder %s849_s26, %s845_s7 }
  0x2e   : > { %p847_p3 = pnand %p846_p1, %p1025_p0 }
  0x2f   : > { %605 = vmatmul.msk.bf16.vlgmr.msra.gmra.mxu0 %vm345_vm0, %v324_v5  ;;  %p852_p12 = por %p851_p10, %p850_p9 }
  0x30   : > { %p848_p8 = pneg %p847_p3 }
  0x31   : > { %431 = vmatpush.bf16.msra.mxu1 %v649_v6 }
  0x32   : > { %p853_p13 = pnand %p852_p12, %p848_p8 }
  0x35   : > { %432 = vmatpush.bf16.msra.mxu1 %v648_v7 }
  0x39   : > { %433 = vmatpush.bf16.msra.mxu1 %v647_v8 }
  0x3d   : > { %434 = vmatpush.bf16.msra.mxu1 %v646_v9 }
  0x41   : > { %435 = vmatpush.bf16.msra.mxu1 %v645_v10 }
  0x45   : > { %436 = vmatpush.bf16.msra.mxu1 %v644_v11 }
  0xac   : > { %v358_v13 = vpop.f32.mrf.mxu0 }
  0xad   : > { %v359_v14 = vadd.f32 %v737_v12, %v358_v13 }
  0xaf   : > { %v362_v15 = vmax.f32 %v359_v14, 0.0 }
  0xb1   : > { %v364_v16 = vpack.c.bf16 %v362_v15, %v362_v15 }
  0xb3   : > { %437 = vmatmul.bf16.vlgmr.msra.gmra.mxu1 %v364_v16 }
  0xb4   : > { %v360_v17 = vpop.f32.mrf.mxu0 }
 0x130   : > { %v438_v19 = vpop.f32.mrf.mxu1 }
 0x131   : > { %v452_v20 = vadd.f32 %v738_v18, %v438_v19 }
 0x133   : > { %453 = vst [vmem:[%s312_s12] sm:$0xff] %v452_v20 }
 0x134   : > { %856 = shalt.err (!%p853_p13)
}
 0x135   : > { %662 = dma.vmem_to_hbm [thread:$0]  (%p1025_p0), %s468_s13, 128, %s470_s15, %s455_s24  }
 0x138   : > { %v440_v21 = vpop.f32.mrf.mxu1 }
 0x139 PF: > { %s481_s16 = sand.u32 1, %s895_s18   ;;  %p676_p2 = pnand %p589_p6, %p1032_p5 }
 0x13a   : > { %s482_s8 = scalar_lea.sflag [#allocation5], %s481_s16 }
 0x13b   : > { %p677_p4 = pneg %p676_p2 }
 0x13d   : > { %890 = dma.done.wait (%p677_p4), %s482_s8, 128  }
 0x13e   : > { %892 = vsyncadd (%p677_p4), %s482_s8, 4294967168  ;;  %s22_s23 = sadd.s32 1, %s915_s23   ;;  %s1116_s18 = smov %s899_s19 }
 0x13f   : > { %p19_p7 = scmp.ge.s32.totalorder %s22_s23, 4   ;;  %s1117_s19 = smov %s903_s20 }
 0x140   : > { %s1118_s20 = smov %s1030_s28  ;;  %s1119_s21 = smov %s911_s22 }
 0x141   : > { %s1120_s22 = smov %s1122_s14  ;;  %21 = sbr.rel (!%p19_p7) target bundleno = 7 (0x7), region = 106 }
 0x146   :  { %488 = vsyncpa [#allocation4], 1 }
 0x147   :  { %490 = vsyncpa [#allocation4 + $0x1], 1 }
 0x148   :  { %491 = vsyncpa [#allocation7], 1 }
 0x149   :  { %492 = vsyncpa [#allocation5], 1 }
 0x14a   :  { %494 = vsyncpa [#allocation5 + $0x1], 1 }

</bundles_post_ra>
